<compile_context>
chip_gen: v5e
topology: v5e:2x2
jax: 0.10.0
libtpu: 0.0.40
codegen_flags: <defaults>
</compile_context>

<pallas_src>
import jax
import jax.numpy as jnp
from jax.experimental import pallas as pl
from jax.experimental.pallas import tpu as pltpu


# ------------------------------------------------------------ packed layout ---
_IN = 19          # HumanConcepts2 feature width (nn.Linear(19, concept_size))
_HID = 64         # hidden width of the co MLP
_ROW_WSC = 0      # rows [  0: 19)  Wsc^T  (19, concept) zero-padded to 64 lanes
_ROW_W1 = 24      # rows [ 24: 88)  W1^T   (concept, 64) zero-padded to 64 rows
_ROW_W2 = 88      # rows [ 88:152)  W2^T   (64, 64)
_ROW_W3 = 152     # rows [152:216)  W3^T   (64, output) zero-padded to 64 lanes
_ROW_B = 216      # rows [216:220)  b_sc, b1, b2, b3 (each one 64-lane row)
_PACK_ROWS = 224  # padded to a multiple of 8 sublanes


def pack_params(params):
    """Pre-transpose + zero-pad + pack all parameters into one (224, 64) slab.

    Done once per weight update (outside the per-forward hot path)."""
    wsc, bsc, w1, b1, w2, b2, w3, b3 = params
    concept_size = wsc.shape[0]
    output_size = w3.shape[0]
    slab = jnp.zeros((_PACK_ROWS, _HID), jnp.float32)
    slab = slab.at[_ROW_WSC:_ROW_WSC + _IN, 0:concept_size].set(wsc.T)
    slab = slab.at[_ROW_W1:_ROW_W1 + concept_size, :].set(w1.T)
    slab = slab.at[_ROW_W2:_ROW_W2 + _HID, :].set(w2.T)
    slab = slab.at[_ROW_W3:_ROW_W3 + _HID, 0:output_size].set(w3.T)
    slab = slab.at[_ROW_B + 0, 0:concept_size].set(bsc.reshape(-1))
    slab = slab.at[_ROW_B + 1, :].set(b1.reshape(-1))
    slab = slab.at[_ROW_B + 2, :].set(b2.reshape(-1))
    slab = slab.at[_ROW_B + 3, 0:output_size].set(b3.reshape(-1))
    return slab


# ----------------------------------------------------------- forward kernel ---
def cbm_fwd_kernel(h_ref, p_ref, out_ref):
    h = h_ref[...]                                   # (B, 19)

    wsc_t = p_ref[_ROW_WSC:_ROW_WSC + _IN, :]        # (19, 64)
    w1_t = p_ref[_ROW_W1:_ROW_W1 + _HID, :]          # (64, 64)  (zero rows past concept)
    w2_t = p_ref[_ROW_W2:_ROW_W2 + _HID, :]          # (64, 64)
    w3_t = p_ref[_ROW_W3:_ROW_W3 + _HID, :]          # (64, 64)  (zero lanes past output)
    bias_blk = p_ref[_ROW_B:_ROW_B + 8, :]           # (8, 64) bias block (rows 4..7 unused)
    b_sc = bias_blk[0:1, :]
    b1 = bias_blk[1:2, :]
    b2 = bias_blk[2:3, :]
    b3 = bias_blk[3:4, :]

    # MXU-native (M,K) x (K,N) matmuls -- no RHS transpose needed.
    c = jnp.dot(h, wsc_t, preferred_element_type=jnp.float32) + b_sc          # (B, 64)
    z = jnp.maximum(jnp.dot(c, w1_t, preferred_element_type=jnp.float32) + b1, 0.0)
    z = jnp.maximum(jnp.dot(z, w2_t, preferred_element_type=jnp.float32) + b2, 0.0)
    o = jnp.dot(z, w3_t, preferred_element_type=jnp.float32) + b3             # (B, 64)

    # Single lane-dense (B, 128) store: lanes 0..63 = c (padded), 64..127 = output (padded).
    out_ref[...] = jnp.concatenate([c, o], axis=1).astype(out_ref.dtype)


# ------------------------------------------------- weight-only losses kernel --
def cbm_loss_kernel(wsc_ref, loss_ref):
    wsc = wsc_ref[...]                               # (concept, 19)

    l1 = jnp.sum(jnp.abs(wsc)).reshape(1, 1)

    # F.normalize(w, p=2, dim=1): w / max(||w||, 1e-12)  ==  w * rsqrt(max(ss, 1e-24))
    ss = jnp.sum(wsc * wsc, axis=1, keepdims=True)
    wn = wsc * jax.lax.rsqrt(jnp.maximum(ss, 1e-24))

    dn = (((1,), (1,)), ((), ()))                    # Gram matrix wn @ wn.T
    cs = jax.lax.dot_general(wn, wn, dn, preferred_element_type=jnp.float32)
    n = float(cs.shape[0])
    # sum((cs - I)^2) = sum(cs^2) - 2*trace(cs) + n ; trace(cs) == sum(wn*wn)
    div = (jnp.sum(cs * cs) - 2.0 * jnp.sum(wn * wn) + n).reshape(1, 1)

    lane = jax.lax.broadcasted_iota(jnp.int32, (1, 2), 1)
    loss_ref[...] = jnp.where(lane == 0, l1, div)    # merged (1, 2) output


# ------------------------------------------------------------------ wrappers --
_VMEM_SPEC = pl.BlockSpec(memory_space=pltpu.MemorySpace.VMEM)


def cbm_forward(h, wpack, concept_size, output_size):
    """Data-dependent part of the forward: returns (c, output)."""
    B = h.shape[0]
    combined = pl.pallas_call(
        cbm_fwd_kernel,
        out_shape=jax.ShapeDtypeStruct((B, 2 * _HID), jnp.float32),
        in_specs=[_VMEM_SPEC, _VMEM_SPEC],
        out_specs=_VMEM_SPEC,
    )(h, wpack)
    c = combined[:, :concept_size]
    output = combined[:, _HID:_HID + output_size]
    return c, output


def cbm_losses(wsc):
    """Weight-only regularizers (l1_loss, diversity_loss). Cacheable per weight update."""
    losses = pl.pallas_call(
        cbm_loss_kernel,
        out_shape=jax.ShapeDtypeStruct((1, 2), jnp.float32),
        in_specs=[_VMEM_SPEC],
        out_specs=_VMEM_SPEC,
    )(wsc)
    return losses[0, 0], losses[0, 1]


def cbm_forward_full(h, params):
    """Full module forward: (c, output, l1_loss, diversity_loss)."""
    wsc = params[0]
    concept_size = wsc.shape[0]
    output_size = params[6].shape[0]
    wpack = pack_params(params)          # in a training loop: do this once per update
    c, output = cbm_forward(h, wpack, concept_size, output_size)
    l1_loss, diversity_loss = cbm_losses(wsc)
    return c, output, l1_loss, diversity_loss


# -------------------------------------------------------- parameter set-up ---
def init_params(key, concept_size, output_size):
    """Deterministic PyTorch-Linear-style init (uniform(-1/sqrt(fan_in), +))."""
    def linear(key, out_f, in_f):
        kw, kb = jax.random.split(key)
        bound = 1.0 / jnp.sqrt(in_f)
        w = jax.random.uniform(kw, (out_f, in_f), jnp.float32, -bound, bound)
        b = jax.random.uniform(kb, (1, out_f), jnp.float32, -bound, bound)
        return w, b

    k_sc, k1, k2, k3 = jax.random.split(key, 4)
    wsc, bsc = linear(k_sc, concept_size, _IN)
    w1, b1 = linear(k1, _HID, concept_size)
    w2, b2 = linear(k2, _HID, _HID)
    w3, b3 = linear(k3, output_size, _HID)
    return (wsc, bsc, w1, b1, w2, b2, w3, b3)


def human_concepts2(x):
    # TODO(synk): HumanConcepts2 is not defined in the provided source; the sc layer
    # expects 19 features, so we take input_size == 19 and pass x through unchanged.
    return x


# -------------------------------------------------------------------- main ---
if __name__ == "__main__":
    key = jax.random.PRNGKey(0)
    k_x, k_p = jax.random.split(key)

    B = 8
    input_size = _IN     # HumanConcepts2 output / sc input width
    concept_size = 8
    output_size = 4

    x = jax.random.normal(k_x, (B, input_size), jnp.float32)
    params = init_params(k_p, concept_size, output_size)

    h = human_concepts2(x)
    c, output, l1_loss, diversity_loss = cbm_forward_full(h, params)
    jax.block_until_ready((c, output, l1_loss, diversity_loss))

    # lightweight pure-JAX reference check of the same math
    wsc, bsc, w1, b1, w2, b2, w3, b3 = params
    c_ref = h @ wsc.T + bsc
    z = jnp.maximum(c_ref @ w1.T + b1, 0.0)
    z = jnp.maximum(z @ w2.T + b2, 0.0)
    out_ref = z @ w3.T + b3
    l1_ref = jnp.sum(jnp.abs(wsc))
    wn = wsc / jnp.maximum(jnp.linalg.norm(wsc, axis=1, keepdims=True), 1e-12)
    cs = wn @ wn.T - jnp.eye(concept_size)
    div_ref = jnp.sum(cs ** 2)

    assert jnp.allclose(c, c_ref, atol=1e-3, rtol=1e-3)
    assert jnp.allclose(output, out_ref, atol=1e-3, rtol=1e-3)
    assert jnp.allclose(l1_loss, l1_ref, atol=1e-3, rtol=1e-3)
    assert jnp.allclose(diversity_loss, div_ref, atol=1e-3, rtol=1e-3)

    print("KERNEL_OK")
</pallas_src>

<mosaic_0001>
module attributes {stable_mosaic.version = 11 : i64} {
  func.func @cbm_fwd_kernel(%arg0: memref<8x19xf32, #tpu.memory_space<vmem>>, %arg1: memref<224x64xf32, #tpu.memory_space<vmem>>, %arg2: memref<8x128xf32, #tpu.memory_space<vmem>>) attributes {dimension_semantics = [], scalar_prefetch = 0 : i64, scratch_operands = 0 : i64, tpu.core_type = #tpu.core_type<tc>} {
    %c0 = arith.constant 0 : index
    %c0_0 = arith.constant 0 : index
    %0 = vector.load %arg0[%c0, %c0_0] : memref<8x19xf32, #tpu.memory_space<vmem>>, vector<8x19xf32>
    %c0_1 = arith.constant 0 : index
    %c0_2 = arith.constant 0 : index
    %1 = vector.load %arg1[%c0_1, %c0_2] : memref<224x64xf32, #tpu.memory_space<vmem>>, vector<19x64xf32>
    %c24 = arith.constant 24 : index
    %c0_3 = arith.constant 0 : index
    %2 = vector.load %arg1[%c24, %c0_3] : memref<224x64xf32, #tpu.memory_space<vmem>>, vector<64x64xf32>
    %c88 = arith.constant 88 : index
    %c0_4 = arith.constant 0 : index
    %3 = vector.load %arg1[%c88, %c0_4] : memref<224x64xf32, #tpu.memory_space<vmem>>, vector<64x64xf32>
    %c152 = arith.constant 152 : index
    %c0_5 = arith.constant 0 : index
    %4 = vector.load %arg1[%c152, %c0_5] : memref<224x64xf32, #tpu.memory_space<vmem>>, vector<64x64xf32>
    %c216 = arith.constant 216 : index
    %c0_6 = arith.constant 0 : index
    %5 = vector.load %arg1[%c216, %c0_6] : memref<224x64xf32, #tpu.memory_space<vmem>>, vector<8x64xf32>
    %6 = vector.extract_strided_slice %5 {offsets = [0, 0], sizes = [1, 64], strides = [1, 1]} : vector<8x64xf32> to vector<1x64xf32>
    %7 = vector.extract_strided_slice %5 {offsets = [1, 0], sizes = [1, 64], strides = [1, 1]} : vector<8x64xf32> to vector<1x64xf32>
    %8 = vector.extract_strided_slice %5 {offsets = [2, 0], sizes = [1, 64], strides = [1, 1]} : vector<8x64xf32> to vector<1x64xf32>
    %9 = vector.extract_strided_slice %5 {offsets = [3, 0], sizes = [1, 64], strides = [1, 1]} : vector<8x64xf32> to vector<1x64xf32>
    %cst = arith.constant dense<0.000000e+00> : vector<8x64xf32>
    %10 = tpu.matmul %0, %1, %cst {dimension_numbers = #tpu.dot_dimension_numbers<[1], [0], [0], [1], [0, 0, 1, 1], [], []>} : vector<8x19xf32>, vector<19x64xf32>, vector<8x64xf32> -> vector<8x64xf32>
    %11 = vector.broadcast %6 : vector<1x64xf32> to vector<8x64xf32>
    %12 = arith.addf %10, %11 : vector<8x64xf32>
    %cst_7 = arith.constant dense<0.000000e+00> : vector<8x64xf32>
    %13 = tpu.matmul %12, %2, %cst_7 {dimension_numbers = #tpu.dot_dimension_numbers<[1], [0], [0], [1], [0, 0, 1, 1], [], []>} : vector<8x64xf32>, vector<64x64xf32>, vector<8x64xf32> -> vector<8x64xf32>
    %14 = vector.broadcast %7 : vector<1x64xf32> to vector<8x64xf32>
    %15 = arith.addf %13, %14 : vector<8x64xf32>
    %cst_8 = arith.constant 0.000000e+00 : f32
    %16 = vector.broadcast %cst_8 : f32 to vector<8x64xf32>
    %17 = arith.maximumf %15, %16 : vector<8x64xf32>
    %cst_9 = arith.constant dense<0.000000e+00> : vector<8x64xf32>
    %18 = tpu.matmul %17, %3, %cst_9 {dimension_numbers = #tpu.dot_dimension_numbers<[1], [0], [0], [1], [0, 0, 1, 1], [], []>} : vector<8x64xf32>, vector<64x64xf32>, vector<8x64xf32> -> vector<8x64xf32>
    %19 = vector.broadcast %8 : vector<1x64xf32> to vector<8x64xf32>
    %20 = arith.addf %18, %19 : vector<8x64xf32>
    %cst_10 = arith.constant 0.000000e+00 : f32
    %21 = vector.broadcast %cst_10 : f32 to vector<8x64xf32>
    %22 = arith.maximumf %20, %21 : vector<8x64xf32>
    %cst_11 = arith.constant dense<0.000000e+00> : vector<8x64xf32>
    %23 = tpu.matmul %22, %4, %cst_11 {dimension_numbers = #tpu.dot_dimension_numbers<[1], [0], [0], [1], [0, 0, 1, 1], [], []>} : vector<8x64xf32>, vector<64x64xf32>, vector<8x64xf32> -> vector<8x64xf32>
    %24 = vector.broadcast %9 : vector<1x64xf32> to vector<8x64xf32>
    %25 = arith.addf %23, %24 : vector<8x64xf32>
    %26 = tpu.concatenate %12, %25 in 1 : vector<8x64xf32>, vector<8x64xf32> -> vector<8x128xf32>
    %c0_12 = arith.constant 0 : index
    %c0_13 = arith.constant 0 : index
    %27 = vector.load %arg2[%c0_12, %c0_13] : memref<8x128xf32, #tpu.memory_space<vmem>>, vector<8x128xf32>
    tpu.vector_store %arg2[%c0_12, %c0_13], %26 {strides = array<i32>} : memref<8x128xf32, #tpu.memory_space<vmem>>, vector<8x128xf32>,
    return
  }
}

</mosaic_0001>

<bundles_post_ra>
// kernel: tpu_custom_call.1
= control target key start
LH: loop header
LB: loop body
LE: loop exit
PB: predicated region body
PF: predicated region fallthrough
CT: control target
= control target key end

     0   :  { %vm46_vm0 = vcmask 1042432   ;;  %vm42_vm1 = vcmask 154624   ;;  %s311_s0 = inlined_call_operand.vmem [shape: f32[8,19], index: 0, kind: input, shape index: {}]   ;;  %s312_s1 = inlined_call_operand.vmem [shape: f32[224,64], index: 1, kind: input, shape index: {}]   ;;  %s313_s2 = inlined_call_operand.hbm [shape: f32[8,128], index: 2, kind: output, shape index: {}]  }
   0x1   :  { %v15_v0 = vld [vmem:[%s312_s1 + $0x10] sm:$0x7]  ;;  %v14_v1 = vld [vmem:[%s312_s1 + $0x8] sm:$0xff]  ;;  %v13_v4 = vld [vmem:[%s312_s1] sm:$0xff] }
   0x2   :  { %167 = vmatpush.msk.msra.mxu0 %vm46_vm0, %v15_v0  ;;  %v23_v2 = vld [vmem:[%s312_s1 + $0x50] sm:$0xff]  ;;  %v22_v3 = vld [vmem:[%s312_s1 + $0x48] sm:$0xff]  ;;  %v12_v5 = vld [vmem:[%s311_s0] sm:$0xff] }
   0x3   :  { %83 = vmatpush.msra.mxu1 %v23_v2  ;;  %v21_v6 = vld [vmem:[%s312_s1 + $0x40] sm:$0xff] }
   0x4   :  { %64 = vmatpush.msra.mxu0 %v14_v1 }
   0x5   :  { %7 = vsyncpa [#allocation3], 0  ;;  %84 = vmatpush.msra.mxu1 %v22_v3  ;;  %v20_v7 = vld [vmem:[%s312_s1 + $0x38] sm:$0xff]  ;;  %v19_v8 = vld [vmem:[%s312_s1 + $0x30] sm:$0xff]  ;;  %vm71_vm2 = vcmask 523264   ;;  %s200_s9 = smov 64  }
   0x6   :  { %65 = vmatpush.msra.mxu0 %v13_v4  ;;  %v18_v9 = vld [vmem:[%s312_s1 + $0x28] sm:$0xff]  ;;  %v17_v10 = vld [vmem:[%s312_s1 + $0x20] sm:$0xff]  ;;  %v16_v11 = vld [vmem:[%s312_s1 + $0x18] sm:$0xff]  ;;  %s201_s10 = smov [#allocation2]   ;;  %s158_s14 = sshll.u32 %s313_s2, 4  ;;  %s159_s14 = int_to_ptr.hbm [resolvable:$true] %s158_s14 }
   0x7   :  { %168 = vmatmul.msk.f32.vlgmr.msra.gmra.mxu0 %vm42_vm1, %v12_v5  ;;  %85 = vmatpush.msra.mxu1 %v21_v6  ;;  %v31_v12 = vld [vmem:[%s312_s1 + $0x90] sm:$0xff]  ;;  %v30_v13 = vld [vmem:[%s312_s1 + $0x88] sm:$0xff]  ;;  %v29_v14 = vld [vmem:[%s312_s1 + $0x80] sm:$0xff]  ;;  %s156_s11 = sshll.u32 %s201_s10, 4  ;;  %s157_s11 = int_to_ptr.vmem [resolvable:$true] %s156_s11 }
   0x8   :  { %108 = vmatpush.msra.mxu2 %v31_v12  ;;  %v28_v15 = vld [vmem:[%s312_s1 + $0x78] sm:$0xff]  ;;  %v27_v16 = vld [vmem:[%s312_s1 + $0x70] sm:$0xff]  ;;  %v26_v21 = vld [vmem:[%s312_s1 + $0x68] sm:$0xff] }
   0x9   :  { %86 = vmatpush.msra.mxu1 %v20_v7  ;;  %v40_v17 = vld [vmem:[%s312_s1 + $0xd8] sm:$0xff]  ;;  %v25_v22 = vld [vmem:[%s312_s1 + $0x60] sm:$0xff]  ;;  %v39_v24 = vld [vmem:[%s312_s1 + $0xd0] sm:$0xff] }
   0xa   :  { %109 = vmatpush.msra.mxu2 %v30_v13  ;;  %v41_v18 = vperm.slane %v40_v17, 0  ;;  %v24_v23 = vld [vmem:[%s312_s1 + $0x58] sm:$0xff]  ;;  %v38_v25 = vld [vmem:[%s312_s1 + $0xc8] sm:$0xff]  ;;  %133 = vmatpush.msra.mxu3 %v39_v24  ;;  %v37_v26 = vld [vmem:[%s312_s1 + $0xc0] sm:$0xff]  ;;  %v70_v29 = vperm.slane %v40_v17, 1  ;;  %v96_v36 = vperm.slane %v40_v17, 2 }
   0xb   :  { %87 = vmatpush.msra.mxu1 %v19_v8  ;;  %v36_v27 = vld [vmem:[%s312_s1 + $0xb8] sm:$0xff]  ;;  %v35_v28 = vld [vmem:[%s312_s1 + $0xb0] sm:$0xff]  ;;  %v34_v33 = vld [vmem:[%s312_s1 + $0xa8] sm:$0xff]  ;;  %v121_v40 = vperm.slane %v40_v17, 3 }
   0xc   :  { %110 = vmatpush.msra.mxu2 %v29_v14  ;;  %134 = vmatpush.msra.mxu3 %v38_v25  ;;  %v33_v34 = vld [vmem:[%s312_s1 + $0xa0] sm:$0xff]  ;;  %v32_v35 = vld [vmem:[%s312_s1 + $0x98] sm:$0xff] }
   0xd   :  { %88 = vmatpush.msra.mxu1 %v18_v9 }
   0xe   :  { %111 = vmatpush.msra.mxu2 %v28_v15  ;;  %135 = vmatpush.msra.mxu3 %v37_v26 }
   0xf   :  { %89 = vmatpush.msra.mxu1 %v17_v10 }
  0x10   :  { %112 = vmatpush.msra.mxu2 %v27_v16  ;;  %136 = vmatpush.msra.mxu3 %v36_v27 }
  0x11   :  { %90 = vmatpush.msra.mxu1 %v16_v11 }
  0x12   :  { %113 = vmatpush.msra.mxu2 %v26_v21  ;;  %137 = vmatpush.msra.mxu3 %v35_v28 }
  0x14   :  { %114 = vmatpush.msra.mxu2 %v25_v22  ;;  %138 = vmatpush.msra.mxu3 %v34_v33 }
  0x16   :  { %115 = vmatpush.msra.mxu2 %v24_v23  ;;  %139 = vmatpush.msra.mxu3 %v33_v34 }
  0x18   :  { %140 = vmatpush.msra.mxu3 %v32_v35 }
  0x84   :  { %v67_v19 = vpop.f32.mrf.mxu0 }
  0x85   :  { %v68_v20 = vadd.f32 %v67_v19, %v41_v18 }
  0x87   :  { %169 = vmatmul.msk.f32.vlgmr.msra.gmra.mxu1 %vm71_vm2, %v68_v20 }
 0x104   :  { %v92_v30 = vpop.f32.mrf.mxu1 }
 0x105   :  { %v93_v31 = vadd.f32 %v92_v30, %v70_v29 }
 0x107   :  { %v95_v32 = vmax.f32 %v93_v31, 0.0 }
 0x109   :  { %170 = vmatmul.msk.f32.vlgmr.msra.gmra.mxu2 %vm71_vm2, %v95_v32 }
 0x18c   :  { %v117_v37 = vpop.f32.mrf.mxu2 }
 0x18d   :  { %v118_v38 = vadd.f32 %v117_v37, %v96_v36 }
 0x18f   :  { %v120_v39 = vmax.f32 %v118_v38, 0.0 }
 0x191   :  { %171 = vmatmul.msk.f32.vlgmr.msra.gmra.mxu3 %vm71_vm2, %v120_v39 }
 0x214   :  { %v142_v41 = vpop.f32.mrf.mxu3 }
 0x215   :  { %v143_v42 = vadd.f32 %v142_v41, %v121_v40 }
 0x217   :  { %146 = vrot.lane.b32.xlu0 %v143_v42, %s200_s9 }
 0x289   :  { %v147_v43 = vpop.permute.xlu0 %146 }
 0x28a   :  { %v149_v44 = vsel %vm71_vm2, %v68_v20, %v147_v43 }
 0x28b   :  { %150 = vst [vmem:[#allocation2] sm:$0xff] %v149_v44 }
 0x28c   :  { %161 = dma.vmem_to_hbm [thread:$0]  %s157_s11, 128, %s159_s14, [#allocation3]  }
 0x28d   :  { %198 = dma.done.wait [#allocation3], 128  }
 0x28e   :  { %199 = vsyncadd [#allocation3], 4294967168 }
 0x28f   :  { %166 = vsyncpa [#allocation3], 1 }

</bundles_post_ra>
